<compile_context>
chip_gen: v7x
topology: tpu7x:2x2x1
jax: 0.10.0
libtpu: 0.0.40
codegen_flags: <defaults>
</compile_context>

<pallas_src>
import numpy as np

import jax
import jax.numpy as jnp
from jax.experimental import pallas as pl
from jax.experimental.pallas import tpu as pltpu


def _round_up(x, m):
    return ((x + m - 1) // m) * m


def pick_batch_tile(B, max_tb=8):
    """Largest divisor of B that is <= max_tb (kron-S cost grows with tb^2)."""
    return max(d for d in range(1, min(B, max_tb) + 1) if B % d == 0)


# ---------------------------------------------------------------------------
# Offline packing: fold padding + strided im2col + weight layout + cond channel
# + batch tiling into constants.  Each layer becomes
#     G     = [S[0]@H | S[1]@H | ... ]        (0/1 z-selection, batch-block-diag)
#     H_out = G @ BWstack + bias_row           (one wide-K MXU matmul)
# ---------------------------------------------------------------------------
def pack_encoder(params, Z, A, ch_in, cond_dim, tb, compute_dtype=jnp.bfloat16):
    layers = []
    Zin, Ain = Z, A
    Cin = ch_in + cond_dim
    ac_real0 = A * ch_in
    acpad_in0 = max(128, _round_up(ac_real0 + cond_dim, 128))   # lane-dense input
    ACpad = acpad_in0
    first = True

    for (w, b, k, stride, pad_z, act) in params:
        w = np.asarray(w, np.float32)
        b = np.asarray(b, np.float32)
        Cout, Cin_w, kz, ka = w.shape
        assert Cin_w == Cin, (Cin_w, Cin)
        sz, sa = stride

        pa = ka - sa
        pa_l = pa // 2
        Aout = (Ain + pa - ka) // sa + 1
        if pad_z:
            pz = kz - sz
            pz_l = pz // 2
        else:
            pz, pz_l = 0, 0
        Zout = (Zin + pz - kz) // sz + 1

        N = Aout * Cout
        Npad = max(128, _round_up(N, 128))                      # lane-dense output

        # BW[dz]: (ACpad_in, Npad); circular-alpha gather + weight reshuffle folded in.
        BW = np.zeros((kz, ACpad, Npad), np.float32)
        for dz in range(kz):
            for da in range(ka):
                for ao in range(Aout):
                    a = (sa * ao + da - pa_l) % Ain
                    for c in range(Cin):
                        if first and c >= ch_in:
                            col_in = ac_real0 + (c - ch_in)      # cond rides in a pad lane
                        else:
                            col_in = a * (ch_in if first else Cin) + c
                        BW[dz, col_in, ao * Cout:(ao + 1) * Cout] += w[:, c, dz, da]

        bias_row = np.zeros((1, Npad), np.float32)
        bias_row[0, :N] = np.tile(b, Aout)

        # S[dz]: (Zout, Zin) strided z-row selection; missing rows = zero pad.
        S = np.zeros((kz, Zout, Zin), np.float32)
        for dz in range(kz):
            for zo in range(Zout):
                z = sz * zo + dz - pz_l
                if 0 <= z < Zin:
                    S[dz, zo, z] = 1.0
        has_s = not (kz == 1 and Zout == Zin and
                     np.array_equal(S[0], np.eye(Zin, dtype=np.float32)))

        layer_args = []
        if has_s:
            eye = np.eye(tb, dtype=np.float32)
            s_full = np.stack([np.kron(eye, S[dz]) for dz in range(kz)])
            layer_args.append(jnp.asarray(s_full, compute_dtype))
        # wide-K merge: stack the kz weight blocks along rows (single matmul / layer)
        layer_args.append(jnp.asarray(BW.reshape(kz * ACpad, Npad), compute_dtype))
        layer_args.append(jnp.asarray(bias_row, jnp.float32))
        layers.append({"args": layer_args, "kz": kz, "act": act, "has_s": has_s})

        Zin, Ain, Cin = Zout, Aout, Cout
        ACpad = Npad
        first = False

    return {
        "layers": layers,
        "tb": tb,
        "acpad_in": acpad_in0,
        "Z_last": Zin, "A_last": Ain, "C_last": Cin,
        "N_pad": int(layers[-1]["args"][-2].shape[-1]),
        "compute_dtype": compute_dtype,
    }


# ---------------------------------------------------------------------------
# Fused Pallas kernel: all layers, activations stay in VMEM / vregs
# ---------------------------------------------------------------------------
def _make_fused_kernel(layer_meta, compute_dtype):
    """layer_meta: tuple of (kz, apply_swish, has_s) per layer (all static)."""
    n_layers = len(layer_meta)

    def kernel(*refs):
        x_ref = refs[0]
        o_ref = refs[-1]
        h = x_ref[...]                                   # (tb*Z, ACpad) bf16
        r = 1
        hf = None
        for li, (kz, act, has_s) in enumerate(layer_meta):
            if has_s:
                s_ref = refs[r]
                r += 1
            w_ref = refs[r]
            b_ref = refs[r + 1]
            r += 2
            if has_s:
                # 0/1 z-selection gathers (exact), concatenated along 128-aligned lanes
                pieces = [jnp.dot(s_ref[dz], h, preferred_element_type=jnp.float32)
                          for dz in range(kz)]
                g = pieces[0] if kz == 1 else jnp.concatenate(pieces, axis=-1)
                g = g.astype(compute_dtype)
            else:
                g = h
            # one wide-K MXU matmul per layer, f32 accumulation
            hf = jnp.dot(g, w_ref[...], preferred_element_type=jnp.float32)
            hf = hf + b_ref[...]
            if act:
                hf = hf * jax.nn.sigmoid(hf)             # swish (sigmoid on EUP)
            if li + 1 < n_layers:
                h = hf.astype(compute_dtype)
        o_ref[...] = hf.astype(o_ref.dtype)              # single lane-dense store

    return kernel


def encoder_forward_pallas(packed, x, cond, cond_dim=1):
    # z_pad / log_scale not configured in this synthetic instance.
    B, C, Z, A = x.shape
    tb = packed["tb"]
    assert B % tb == 0
    cdt = packed["compute_dtype"]
    acpad = packed["acpad_in"]

    # Single small boundary transpose NCHW -> (B, Z, A*C); the A-vs-C column
    # interleave is folded into the packed BW rows offline.
    xh = jnp.transpose(x, (0, 2, 3, 1)).reshape(B, Z, A * C)
    parts = [xh]
    if cond_dim > 0:
        # cond is constant over (z, alpha): carry it in a single padding lane
        # (no widened NCHW tensor / full-channel broadcast is materialized).
        parts.append(jnp.broadcast_to(cond[:, None, :], (B, Z, cond_dim)).astype(xh.dtype))
    rest = acpad - A * C - cond_dim
    if rest > 0:
        parts.append(jnp.zeros((B, Z, rest), xh.dtype))
    x2d = jnp.concatenate(parts, axis=-1).astype(cdt).reshape(B * Z, acpad)

    layers = packed["layers"]
    Zl, Al, Cl, Npad = (packed["Z_last"], packed["A_last"],
                        packed["C_last"], packed["N_pad"])

    in_specs = [pl.BlockSpec((tb * Z, acpad), lambda i: (i, 0))]
    args = [x2d]
    for L in layers:
        for arr in L["args"]:
            # grid-invariant constants (index 0 every step); footprint is tiny.
            in_specs.append(
                pl.BlockSpec(arr.shape, lambda i, _nd=arr.ndim: (0,) * _nd))
            args.append(arr)

    kernel = _make_fused_kernel(
        tuple((L["kz"], L["act"], L["has_s"]) for L in layers), cdt)

    out2d = pl.pallas_call(
        kernel,
        out_shape=jax.ShapeDtypeStruct((B * Zl, Npad), jnp.float32),
        grid=(B // tb,),
        in_specs=in_specs,
        out_specs=pl.BlockSpec((tb * Zl, Npad), lambda i: (i, 0)),
        compiler_params=pltpu.CompilerParams(
            dimension_semantics=("parallel",)),
    )(*args)

    out = out2d.reshape(B, Zl, Npad)[:, :, :Al * Cl].reshape(B, Zl, Al, Cl)
    return jnp.transpose(out, (0, 3, 1, 2))              # back to NCHW


# ---------------------------------------------------------------------------
# Parameter init (same synthetic config / layout as the PyTorch module)
# ---------------------------------------------------------------------------
def init_encoder_params(key, ch_in, ch_out, cond_dim):
    # (cin, cout, kernel, stride, pad_z, swish_after)
    layer_specs = [
        (ch_in + cond_dim, 16, (3, 3), (2, 2), True, True),   # cconv + swish
        (16, 32, (3, 3), (2, 2), True, True),                 # cconv + swish
        (32, ch_out, (1, 1), (1, 1), False, False),           # final 1x1 cconv
    ]
    params = []
    for ci, co, k, s, pz, act in layer_specs:
        key, kw, kb = jax.random.split(key, 3)
        fan_in = ci * k[0] * k[1]
        bound = 1.0 / (fan_in ** 0.5)
        w = jax.random.uniform(kw, (co, ci, k[0], k[1]), jnp.float32, -bound, bound)
        b = jax.random.uniform(kb, (co,), jnp.float32, -bound, bound)
        params.append((w, b, k, s, pz, act))
    return params


# ---------------------------------------------------------------------------
# Pure-JAX f32 reference (im2col formulation) for a correctness check
# ---------------------------------------------------------------------------
def _ref_cylinder_conv(x, w, b, k, stride, pad_z, act):
    kz, ka = k
    sz, sa = stride
    B, C, Z, A = x.shape
    pa = ka - sa
    pa_l, pa_r = pa // 2, pa - pa // 2
    if pa > 0:
        x = jnp.concatenate([x[..., A - pa_l:], x, x[..., :pa_r]], axis=-1)
    if pad_z:
        pz = kz - sz
        pz_l, pz_r = pz // 2, pz - pz // 2
        if pz > 0:
            x = jnp.pad(x, ((0, 0), (0, 0), (pz_l, pz_r), (0, 0)))
    _, _, Zp, Ap = x.shape
    Zo = (Zp - kz) // sz + 1
    Ao = (Ap - ka) // sa + 1
    xh = jnp.transpose(x, (0, 2, 3, 1))
    cols = [xh[:, dz:dz + sz * Zo:sz, da:da + sa * Ao:sa, :]
            for dz in range(kz) for da in range(ka)]
    patches = jnp.concatenate(cols, axis=-1).reshape(B * Zo * Ao, kz * ka * C)
    wm = jnp.transpose(w, (2, 3, 1, 0)).reshape(kz * ka * C, w.shape[0])
    out = patches @ wm + b
    if act:
        out = out * jax.nn.sigmoid(out)
    return out.reshape(B, Zo, Ao, w.shape[0]).transpose(0, 3, 1, 2)


def encoder_forward_reference(params, x, cond, cond_dim=1):
    if cond_dim > 0:
        B, _, Z, A = x.shape
        xc = jnp.broadcast_to(cond[:, :, None, None], (B, cond_dim, Z, A))
        x = jnp.concatenate([x, xc], axis=1)
    out = x
    for (w, b, k, s, pz, act) in params:
        out = _ref_cylinder_conv(out, w, b, k, s, pz, act)
    return out


if __name__ == "__main__":
    ch_in, ch_out, cond_dim = 4, 8, 1
    B, Z, A = 2, 16, 16

    root = jax.random.PRNGKey(0)
    k_params, k_x, k_cond = jax.random.split(root, 3)

    params = init_encoder_params(k_params, ch_in, ch_out, cond_dim)
    x = jax.random.normal(k_x, (B, ch_in, Z, A), jnp.float32)
    cond = jax.random.normal(k_cond, (B, cond_dim), jnp.float32)

    tb = pick_batch_tile(B, max_tb=8)
    packed = pack_encoder(params, Z, A, ch_in, cond_dim, tb,
                          compute_dtype=jnp.bfloat16)

    out = jax.block_until_ready(
        encoder_forward_pallas(packed, x, cond, cond_dim=cond_dim))
    assert out.shape == (B, ch_out, 4, 4), out.shape

    ref = jax.block_until_ready(
        encoder_forward_reference(params, x, cond, cond_dim=cond_dim))
    max_err = float(jnp.max(jnp.abs(out - ref)))
    # bf16 MXU inputs with f32 accumulation: expected max error ~1e-3 for this
    # shallow net; 1e-2 keeps >10x margin while still catching real bugs.
    assert jnp.allclose(out, ref, rtol=1e-2, atol=1e-2), max_err

    print("KERNEL_OK")
</pallas_src>

<mosaic_0001>
module attributes {stable_mosaic.version = 11 : i64} {
  func.func @kernel(%arg0: i32, %arg1: memref<32x128xbf16, #tpu.memory_space<vmem>>, %arg2: memref<3x16x32xbf16, #tpu.memory_space<vmem>>, %arg3: memref<384x128xbf16, #tpu.memory_space<vmem>>, %arg4: memref<1x128xf32, #tpu.memory_space<vmem>>, %arg5: memref<3x8x16xbf16, #tpu.memory_space<vmem>>, %arg6: memref<384x128xbf16, #tpu.memory_space<vmem>>, %arg7: memref<1x128xf32, #tpu.memory_space<vmem>>, %arg8: memref<128x128xbf16, #tpu.memory_space<vmem>>, %arg9: memref<1x128xf32, #tpu.memory_space<vmem>>, %arg10: memref<8x128xf32, #tpu.memory_space<vmem>>) attributes {dimension_semantics = [#tpu.dimension_semantics<parallel>], iteration_bounds = array<i64: 1>, scalar_prefetch = 0 : i64, scratch_operands = 0 : i64, tpu.core_type = #tpu.core_type<tc>, window_params = [{transform_indices = @transform_0, window_bounds = array<i64: 32, 128>}, {pipeline_mode = #tpu.pipeline_mode<synchronous>, transform_indices = @transform_1, window_bounds = array<i64: 3, 16, 32>}, {pipeline_mode = #tpu.pipeline_mode<synchronous>, transform_indices = @transform_2, window_bounds = array<i64: 384, 128>}, {pipeline_mode = #tpu.pipeline_mode<synchronous>, transform_indices = @transform_3, window_bounds = array<i64: 1, 128>}, {pipeline_mode = #tpu.pipeline_mode<synchronous>, transform_indices = @transform_4, window_bounds = array<i64: 3, 8, 16>}, {pipeline_mode = #tpu.pipeline_mode<synchronous>, transform_indices = @transform_5, window_bounds = array<i64: 384, 128>}, {pipeline_mode = #tpu.pipeline_mode<synchronous>, transform_indices = @transform_6, window_bounds = array<i64: 1, 128>}, {pipeline_mode = #tpu.pipeline_mode<synchronous>, transform_indices = @transform_7, window_bounds = array<i64: 128, 128>}, {pipeline_mode = #tpu.pipeline_mode<synchronous>, transform_indices = @transform_8, window_bounds = array<i64: 1, 128>}, {transform_indices = @transform_9, window_bounds = array<i64: 8, 128>}]} {
    %c0 = arith.constant 0 : index
    %c0_0 = arith.constant 0 : index
    %0 = vector.load %arg1[%c0, %c0_0] : memref<32x128xbf16, #tpu.memory_space<vmem>>, vector<32x128xbf16>
    %c0_1 = arith.constant 0 : index
    %c0_2 = arith.constant 0 : index
    %c0_3 = arith.constant 0 : index
    %1 = vector.load %arg2[%c0_1, %c0_2, %c0_3] : memref<3x16x32xbf16, #tpu.memory_space<vmem>>, vector<1x16x32xbf16>
    %2 = vector.shape_cast %1 : vector<1x16x32xbf16> to vector<16x32xbf16>
    %cst = arith.constant dense<0.000000e+00> : vector<16x128xf32>
    %3 = tpu.matmul %2, %0, %cst {dimension_numbers = #tpu.dot_dimension_numbers<[1], [0], [0], [1], [0, 0, 1, 1], [], []>} : vector<16x32xbf16>, vector<32x128xbf16>, vector<16x128xf32> -> vector<16x128xf32>
    %c1 = arith.constant 1 : index
    %c0_4 = arith.constant 0 : index
    %c0_5 = arith.constant 0 : index
    %4 = vector.load %arg2[%c1, %c0_4, %c0_5] : memref<3x16x32xbf16, #tpu.memory_space<vmem>>, vector<1x16x32xbf16>
    %5 = vector.shape_cast %4 : vector<1x16x32xbf16> to vector<16x32xbf16>
    %cst_6 = arith.constant dense<0.000000e+00> : vector<16x128xf32>
    %6 = tpu.matmul %5, %0, %cst_6 {dimension_numbers = #tpu.dot_dimension_numbers<[1], [0], [0], [1], [0, 0, 1, 1], [], []>} : vector<16x32xbf16>, vector<32x128xbf16>, vector<16x128xf32> -> vector<16x128xf32>
    %c2 = arith.constant 2 : index
    %c0_7 = arith.constant 0 : index
    %c0_8 = arith.constant 0 : index
    %7 = vector.load %arg2[%c2, %c0_7, %c0_8] : memref<3x16x32xbf16, #tpu.memory_space<vmem>>, vector<1x16x32xbf16>
    %8 = vector.shape_cast %7 : vector<1x16x32xbf16> to vector<16x32xbf16>
    %cst_9 = arith.constant dense<0.000000e+00> : vector<16x128xf32>
    %9 = tpu.matmul %8, %0, %cst_9 {dimension_numbers = #tpu.dot_dimension_numbers<[1], [0], [0], [1], [0, 0, 1, 1], [], []>} : vector<16x32xbf16>, vector<32x128xbf16>, vector<16x128xf32> -> vector<16x128xf32>
    %10 = tpu.concatenate %3, %6, %9 in 1 : vector<16x128xf32>, vector<16x128xf32>, vector<16x128xf32> -> vector<16x384xf32>
    %11 = arith.truncf %10 : vector<16x384xf32> to vector<16x384xbf16>
    %c0_10 = arith.constant 0 : index
    %c0_11 = arith.constant 0 : index
    %12 = vector.load %arg3[%c0_10, %c0_11] : memref<384x128xbf16, #tpu.memory_space<vmem>>, vector<384x128xbf16>
    %cst_12 = arith.constant dense<0.000000e+00> : vector<16x128xf32>
    %13 = tpu.matmul %11, %12, %cst_12 {dimension_numbers = #tpu.dot_dimension_numbers<[1], [0], [0], [1], [0, 0, 1, 1], [], []>} : vector<16x384xbf16>, vector<384x128xbf16>, vector<16x128xf32> -> vector<16x128xf32>
    %c0_13 = arith.constant 0 : index
    %c0_14 = arith.constant 0 : index
    %14 = vector.load %arg4[%c0_13, %c0_14] : memref<1x128xf32, #tpu.memory_space<vmem>>, vector<1x128xf32>
    %15 = vector.broadcast %14 : vector<1x128xf32> to vector<16x128xf32>
    %16 = arith.addf %13, %15 : vector<16x128xf32>
    %17 = arith.negf %16 : vector<16x128xf32>
    %18 = math.exp %17 : vector<16x128xf32>
    %cst_15 = arith.constant 1.000000e+00 : f32
    %19 = vector.broadcast %cst_15 : f32 to vector<16x128xf32>
    %20 = arith.addf %19, %18 : vector<16x128xf32>
    %21 = arith.divf %19, %20 : vector<16x128xf32>
    %22 = arith.mulf %16, %21 : vector<16x128xf32>
    %23 = arith.truncf %22 : vector<16x128xf32> to vector<16x128xbf16>
    %c0_16 = arith.constant 0 : index
    %c0_17 = arith.constant 0 : index
    %c0_18 = arith.constant 0 : index
    %24 = vector.load %arg5[%c0_16, %c0_17, %c0_18] : memref<3x8x16xbf16, #tpu.memory_space<vmem>>, vector<1x8x16xbf16>
    %25 = vector.shape_cast %24 : vector<1x8x16xbf16> to vector<8x16xbf16>
    %cst_19 = arith.constant dense<0.000000e+00> : vector<8x128xf32>
    %26 = tpu.matmul %25, %23, %cst_19 {dimension_numbers = #tpu.dot_dimension_numbers<[1], [0], [0], [1], [0, 0, 1, 1], [], []>} : vector<8x16xbf16>, vector<16x128xbf16>, vector<8x128xf32> -> vector<8x128xf32>
    %c1_20 = arith.constant 1 : index
    %c0_21 = arith.constant 0 : index
    %c0_22 = arith.constant 0 : index
    %27 = vector.load %arg5[%c1_20, %c0_21, %c0_22] : memref<3x8x16xbf16, #tpu.memory_space<vmem>>, vector<1x8x16xbf16>
    %28 = vector.shape_cast %27 : vector<1x8x16xbf16> to vector<8x16xbf16>
    %cst_23 = arith.constant dense<0.000000e+00> : vector<8x128xf32>
    %29 = tpu.matmul %28, %23, %cst_23 {dimension_numbers = #tpu.dot_dimension_numbers<[1], [0], [0], [1], [0, 0, 1, 1], [], []>} : vector<8x16xbf16>, vector<16x128xbf16>, vector<8x128xf32> -> vector<8x128xf32>
    %c2_24 = arith.constant 2 : index
    %c0_25 = arith.constant 0 : index
    %c0_26 = arith.constant 0 : index
    %30 = vector.load %arg5[%c2_24, %c0_25, %c0_26] : memref<3x8x16xbf16, #tpu.memory_space<vmem>>, vector<1x8x16xbf16>
    %31 = vector.shape_cast %30 : vector<1x8x16xbf16> to vector<8x16xbf16>
    %cst_27 = arith.constant dense<0.000000e+00> : vector<8x128xf32>
    %32 = tpu.matmul %31, %23, %cst_27 {dimension_numbers = #tpu.dot_dimension_numbers<[1], [0], [0], [1], [0, 0, 1, 1], [], []>} : vector<8x16xbf16>, vector<16x128xbf16>, vector<8x128xf32> -> vector<8x128xf32>
    %33 = tpu.concatenate %26, %29, %32 in 1 : vector<8x128xf32>, vector<8x128xf32>, vector<8x128xf32> -> vector<8x384xf32>
    %34 = arith.truncf %33 : vector<8x384xf32> to vector<8x384xbf16>
    %c0_28 = arith.constant 0 : index
    %c0_29 = arith.constant 0 : index
    %35 = vector.load %arg6[%c0_28, %c0_29] : memref<384x128xbf16, #tpu.memory_space<vmem>>, vector<384x128xbf16>
    %cst_30 = arith.constant dense<0.000000e+00> : vector<8x128xf32>
    %36 = tpu.matmul %34, %35, %cst_30 {dimension_numbers = #tpu.dot_dimension_numbers<[1], [0], [0], [1], [0, 0, 1, 1], [], []>} : vector<8x384xbf16>, vector<384x128xbf16>, vector<8x128xf32> -> vector<8x128xf32>
    %c0_31 = arith.constant 0 : index
    %c0_32 = arith.constant 0 : index
    %37 = vector.load %arg7[%c0_31, %c0_32] : memref<1x128xf32, #tpu.memory_space<vmem>>, vector<1x128xf32>
    %38 = vector.broadcast %37 : vector<1x128xf32> to vector<8x128xf32>
    %39 = arith.addf %36, %38 : vector<8x128xf32>
    %40 = arith.negf %39 : vector<8x128xf32>
    %41 = math.exp %40 : vector<8x128xf32>
    %cst_33 = arith.constant 1.000000e+00 : f32
    %42 = vector.broadcast %cst_33 : f32 to vector<8x128xf32>
    %43 = arith.addf %42, %41 : vector<8x128xf32>
    %44 = arith.divf %42, %43 : vector<8x128xf32>
    %45 = arith.mulf %39, %44 : vector<8x128xf32>
    %46 = arith.truncf %45 : vector<8x128xf32> to vector<8x128xbf16>
    %c0_34 = arith.constant 0 : index
    %c0_35 = arith.constant 0 : index
    %47 = vector.load %arg8[%c0_34, %c0_35] : memref<128x128xbf16, #tpu.memory_space<vmem>>, vector<128x128xbf16>
    %cst_36 = arith.constant dense<0.000000e+00> : vector<8x128xf32>
    %48 = tpu.matmul %46, %47, %cst_36 {dimension_numbers = #tpu.dot_dimension_numbers<[1], [0], [0], [1], [0, 0, 1, 1], [], []>} : vector<8x128xbf16>, vector<128x128xbf16>, vector<8x128xf32> -> vector<8x128xf32>
    %c0_37 = arith.constant 0 : index
    %c0_38 = arith.constant 0 : index
    %49 = vector.load %arg9[%c0_37, %c0_38] : memref<1x128xf32, #tpu.memory_space<vmem>>, vector<1x128xf32>
    %50 = vector.broadcast %49 : vector<1x128xf32> to vector<8x128xf32>
    %51 = arith.addf %48, %50 : vector<8x128xf32>
    %c0_39 = arith.constant 0 : index
    %c0_40 = arith.constant 0 : index
    %52 = vector.load %arg10[%c0_39, %c0_40] : memref<8x128xf32, #tpu.memory_space<vmem>>, vector<8x128xf32>
    tpu.vector_store %arg10[%c0_39, %c0_40], %51 {strides = array<i32>} : memref<8x128xf32, #tpu.memory_space<vmem>>, vector<8x128xf32>,
    return
  }
  func.func @transform_0(%arg0: i32) -> (i32, i32) {
    %c0_i32 = arith.constant 0 : i32
    %c0_i32_0 = arith.constant 0 : i32
    return %arg0, %c0_i32 : i32, i32
  }
  func.func @transform_1(%arg0: i32) -> (i32, i32, i32) {
    %c0_i32 = arith.constant 0 : i32
    %c0_i32_0 = arith.constant 0 : i32
    %c0_i32_1 = arith.constant 0 : i32
    %c0_i32_2 = arith.constant 0 : i32
    return %c0_i32, %c0_i32_0, %c0_i32_1 : i32, i32, i32
  }
  func.func @transform_2(%arg0: i32) -> (i32, i32) {
    %c0_i32 = arith.constant 0 : i32
    %c0_i32_0 = arith.constant 0 : i32
    %c0_i32_1 = arith.constant 0 : i32
    return %c0_i32, %c0_i32_0 : i32, i32
  }
  func.func @transform_3(%arg0: i32) -> (i32, i32) {
    %c0_i32 = arith.constant 0 : i32
    %c0_i32_0 = arith.constant 0 : i32
    %c0_i32_1 = arith.constant 0 : i32
    return %c0_i32, %c0_i32_0 : i32, i32
  }
  func.func @transform_4(%arg0: i32) -> (i32, i32, i32) {
    %c0_i32 = arith.constant 0 : i32
    %c0_i32_0 = arith.constant 0 : i32
    %c0_i32_1 = arith.constant 0 : i32
    %c0_i32_2 = arith.constant 0 : i32
    return %c0_i32, %c0_i32_0, %c0_i32_1 : i32, i32, i32
  }
  func.func @transform_5(%arg0: i32) -> (i32, i32) {
    %c0_i32 = arith.constant 0 : i32
    %c0_i32_0 = arith.constant 0 : i32
    %c0_i32_1 = arith.constant 0 : i32
    return %c0_i32, %c0_i32_0 : i32, i32
  }
  func.func @transform_6(%arg0: i32) -> (i32, i32) {
    %c0_i32 = arith.constant 0 : i32
    %c0_i32_0 = arith.constant 0 : i32
    %c0_i32_1 = arith.constant 0 : i32
    return %c0_i32, %c0_i32_0 : i32, i32
  }
  func.func @transform_7(%arg0: i32) -> (i32, i32) {
    %c0_i32 = arith.constant 0 : i32
    %c0_i32_0 = arith.constant 0 : i32
    %c0_i32_1 = arith.constant 0 : i32
    return %c0_i32, %c0_i32_0 : i32, i32
  }
  func.func @transform_8(%arg0: i32) -> (i32, i32) {
    %c0_i32 = arith.constant 0 : i32
    %c0_i32_0 = arith.constant 0 : i32
    %c0_i32_1 = arith.constant 0 : i32
    return %c0_i32, %c0_i32_0 : i32, i32
  }
  func.func @transform_9(%arg0: i32) -> (i32, i32) {
    %c0_i32 = arith.constant 0 : i32
    %c0_i32_0 = arith.constant 0 : i32
    return %arg0, %c0_i32 : i32, i32
  }
}

</mosaic_0001>

<bundles_post_ra>
// kernel: tpu_custom_call.1
= control target key start
LH: loop header
LB: loop body
LE: loop exit
PB: predicated region body
PF: predicated region fallthrough
CT: control target
= control target key end

     0   :  { %14 = vsyncpa [#allocation3], 0  ;;  %s1849_s0 = inlined_call_operand.hbm [shape: bf16[32,128], index: 0, kind: input, shape index: {}]   ;;  %s1850_s1 = inlined_call_operand.hbm [shape: bf16[3,16,32], index: 1, kind: input, shape index: {}]   ;;  %s1851_s2 = inlined_call_operand.hbm [shape: bf16[384,128], index: 2, kind: input, shape index: {}]   ;;  %s1852_s3 = inlined_call_operand.vmem [shape: f32[1,128], index: 3, kind: input, shape index: {}]   ;;  %s1853_s4 = inlined_call_operand.vmem [shape: bf16[3,8,16], index: 4, kind: input, shape index: {}]   ;;  %s1854_s5 = inlined_call_operand.hbm [shape: bf16[384,128], index: 5, kind: input, shape index: {}]   ;;  %s1855_s6 = inlined_call_operand.vmem [shape: f32[1,128], index: 6, kind: input, shape index: {}]   ;;  %s1856_s7 = inlined_call_operand.hbm [shape: bf16[128,128], index: 7, kind: input, shape index: {}]   ;;  %s1857_s8 = inlined_call_operand.vmem [shape: f32[1,128], index: 8, kind: input, shape index: {}]   ;;  %s1858_s9 = inlined_call_operand.hbm [shape: f32[8,128], index: 9, kind: output, shape index: {}]  }
   0x1   :  { %15 = vsyncpa [#allocation6], 0 }
   0x2   :  { %16 = vsyncpa [#allocation9], 0 }
   0x3   :  { %17 = vsyncpa [#allocation4], 0  ;;  %s1613_s30 = smov [#allocation5]   ;;  %s1614_s11 = smov [#allocation8]  }
   0x4   :  { %s35_s10 = sshll.u32 %s1613_s30, 4  ;;  %s63_s12 = sshll.u32 %s1614_s11, 4  ;;  %s36_s10 = int_to_ptr.vmem [resolvable:$true] %s35_s10  ;;  %s1673_s12 = int_to_ptr.vmem [resolvable:$true] %s63_s12 }
   0x5   :  { %s1473_s15 = scalar_lea.hbm %s1850_s1, 384 }
   0x6   :  { %p1474_p0 = scmp.ne.s32.totalorder %s1850_s1, %s1473_s15  ;;  %p1477_p1 = scmp.lt.u32.totalorder %s1473_s15, %s1850_s1 }
   0x8   :  { %p1479_p2 = pnand %p1477_p1, %p1474_p0 }
   0xa   :  { %1482 = shalt.err (!%p1479_p2)
}
   0xb   :  { %s1483_s20 = scalar_lea.vmem %s36_s10, 384  ;;  %p1488_p4 = scmp.lt.s32.totalorder %s36_s10, %s36_s10 }
   0xc   :  { %p1484_p3 = scmp.ne.s32.totalorder %s36_s10, %s1483_s20  ;;  %p1489_p5 = scmp.lt.s32.totalorder %s1483_s20, %s1483_s20 }
   0xe   :  { %p1490_p6 = por %p1489_p5, %p1488_p4 }
  0x10   :  { %p1491_p7 = pnand %p1490_p6, %p1484_p3 }
  0x12   :  { %1494 = shalt.err (!%p1491_p7)
}
  0x13   :  { %s1615_s21 = smov 64   ;;  %s1616_s22 = smov 4  }
  0x14   :  { %41 = dma.hbm_to_vmem [thread:$0]  %s1850_s1, 384, %s36_s10, [#allocation6], %s1615_s21, %s1615_s21, %s1616_s22  }
  0x15   :  { %s1495_s27 = scalar_lea.hbm %s1854_s5, 3072 }
  0x16   :  { %p1496_p8 = scmp.ne.s32.totalorder %s1854_s5, %s1495_s27  ;;  %p1499_p9 = scmp.lt.u32.totalorder %s1495_s27, %s1854_s5 }
  0x18   :  { %p1501_p10 = pnand %p1499_p9, %p1496_p8 }
  0x1a   :  { %1504 = shalt.err (!%p1501_p10)
}
  0x1b   :  { %s1505_s13 = scalar_lea.vmem %s1673_s12, 3072  ;;  %p1510_p12 = scmp.lt.s32.totalorder %s1673_s12, %s1673_s12 }
  0x1c   :  { %p1506_p11 = scmp.ne.s32.totalorder %s1673_s12, %s1505_s13  ;;  %p1511_p13 = scmp.lt.s32.totalorder %s1505_s13, %s1505_s13 }
  0x1e   :  { %p1512_p0 = por %p1511_p13, %p1510_p12 }
  0x20   :  { %p1513_p1 = pnand %p1512_p0, %p1506_p11 }
  0x22   :  { %1516 = shalt.err (!%p1513_p1)
}
  0x23   :  { %69 = dma.hbm_to_vmem [thread:$0]  %s1854_s5, 3072, %s1673_s12, [#allocation9], %s1615_s21, %s1615_s21, %s1616_s22  }
  0x24   :  { %s1617_s14 = smov [#allocation2]   ;;  %s1618_s16 = smov [#allocation7]  }
  0x25   :  { %s23_s15 = sshll.u32 %s1617_s14, 4  ;;  %s47_s17 = sshll.u32 %s1618_s16, 4  ;;  %s24_s15 = int_to_ptr.vmem [resolvable:$true] %s23_s15  ;;  %s1710_s17 = int_to_ptr.vmem [resolvable:$true] %s47_s17 }
  0x26   :  { %s1517_s20 = scalar_lea.hbm %s1849_s0, 256 }
  0x27   :  { %p1518_p2 = scmp.ne.s32.totalorder %s1849_s0, %s1517_s20  ;;  %p1521_p3 = scmp.lt.u32.totalorder %s1517_s20, %s1849_s0 }
  0x29   :  { %p1523_p4 = pnand %p1521_p3, %p1518_p2 }
  0x2b   :  { %1526 = shalt.err (!%p1523_p4)
}
  0x2c   :  { %s1527_s5 = scalar_lea.vmem %s24_s15, 256  ;;  %p1532_p6 = scmp.lt.s32.totalorder %s24_s15, %s24_s15 }
  0x2d   :  { %p1528_p5 = scmp.ne.s32.totalorder %s24_s15, %s1527_s5  ;;  %p1533_p7 = scmp.lt.s32.totalorder %s1527_s5, %s1527_s5 }
  0x2f   :  { %p1534_p8 = por %p1533_p7, %p1532_p6 }
  0x31   :  { %p1535_p9 = pnand %p1534_p8, %p1528_p5 }
  0x33   :  { %1538 = shalt.err (!%p1535_p9)
}
  0x34   :  { %29 = dma.hbm_to_vmem [thread:$0]  %s1849_s0, 256, %s24_s15, [#allocation3], %s1615_s21, %s1615_s21, %s1616_s22  }
  0x35   :  { %s1539_s30 = scalar_lea.hbm %s1851_s2, 3072 }
  0x36   :  { %p1540_p10 = scmp.ne.s32.totalorder %s1851_s2, %s1539_s30  ;;  %p1543_p11 = scmp.lt.u32.totalorder %s1539_s30, %s1851_s2 }
  0x38   :  { %p1545_p12 = pnand %p1543_p11, %p1540_p10 }
  0x3a   :  { %1548 = shalt.err (!%p1545_p12)
}
  0x3b   :  { %s1549_s14 = scalar_lea.vmem %s1710_s17, 3072  ;;  %p1554_p0 = scmp.lt.s32.totalorder %s1710_s17, %s1710_s17 }
  0x3c   :  { %p1550_p13 = scmp.ne.s32.totalorder %s1710_s17, %s1549_s14  ;;  %p1555_p1 = scmp.lt.s32.totalorder %s1549_s14, %s1549_s14 }
  0x3e   :  { %p1556_p2 = por %p1555_p1, %p1554_p0 }
  0x40   :  { %p1557_p3 = pnand %p1556_p2, %p1550_p13 }
  0x42   :  { %1560 = shalt.err (!%p1557_p3)
}
  0x43   :  { %53 = dma.hbm_to_vmem [thread:$0]  %s1851_s2, 3072, %s1710_s17, [#allocation6], %s1615_s21, %s1615_s21, %s1616_s22  }
  0x44   :  { %s1619_s16 = smov [#allocation10]   ;;  %s1561_s23 = scalar_lea.hbm %s1856_s7, 1024 }
  0x45   :  { %s77_s18 = sshll.u32 %s1619_s16, 4  ;;  %p1562_p4 = scmp.ne.s32.totalorder %s1856_s7, %s1561_s23  ;;  %s78_s18 = int_to_ptr.vmem [resolvable:$true] %s77_s18 }
  0x46   :  { %p1565_p5 = scmp.lt.u32.totalorder %s1561_s23, %s1856_s7 }
  0x48   :  { %p1567_p6 = pnand %p1565_p5, %p1562_p4 }
  0x4a   :  { %1570 = shalt.err (!%p1567_p6)
}
  0x4b   :  { %s1571_s12 = scalar_lea.vmem %s78_s18, 1024  ;;  %p1576_p8 = scmp.lt.s32.totalorder %s78_s18, %s78_s18 }
  0x4c   :  { %p1572_p7 = scmp.ne.s32.totalorder %s78_s18, %s1571_s12  ;;  %p1577_p9 = scmp.lt.s32.totalorder %s1571_s12, %s1571_s12 }
  0x4e   :  { %p1578_p10 = por %p1577_p9, %p1576_p8 }
  0x50   :  { %p1579_p11 = pnand %p1578_p10, %p1572_p7 }
  0x52   :  { %1582 = shalt.err (!%p1579_p11)
}
  0x53   :  { %83 = dma.hbm_to_vmem [thread:$0]  %s1856_s7, 1024, %s78_s18, [#allocation9], %s1615_s21, %s1615_s21, %s1616_s22  }
  0x54   :  { %1605 = dma.done.wait [#allocation3], 256  }
  0x55   :  { %1606 = vsyncadd [#allocation3], 4294967040 }
  0x56   :  { %1607 = dma.done.wait [#allocation6], 3456  }
  0x57   :  { %1608 = vsyncadd [#allocation6], 4294963840 }
  0x58   :  { %1609 = dma.done.wait [#allocation9], 4096  }
  0x59   :  { %1610 = vsyncadd [#allocation9], 4294963200  ;;  %v1620_v0 = vmov 0.0   ;;  %vm1621_vm0 = vmmov 0   ;;  %v1400_v1 = vld [vmem:[#allocation2] sm:$0xff]   ;;  %v1401_v2 = vld [vmem:[#allocation2 + $0x8] sm:$0xff]  }
  0x5a   :  { %1288 = vmatprep.subr.bf16.mxu1 %v1620_v0  ;;  %1292 = vmatprep.mubr.msk.bf16.mxu1 %vm1621_vm0, %v1620_v0  ;;  %v1402_v3 = vld [vmem:[#allocation5] sm:$0xff]   ;;  %vm125_vm1 = vcmask 261120   ;;  %v1410_v4 = vld [vmem:[#allocation7 + $0x80] sm:$0xff]   ;;  %v1403_v5 = vld [vmem:[#allocation5 + $0x8] sm:$0xff]   ;;  %vm574_vm2 = vcmask 130048  }
  0x5b   :  { %1312 = vmatprep.subr.bf16.mxu0 %v1620_v0  ;;  %1328 = vmatprep.mubr.msk.bf16.mxu0 %vm1621_vm0, %v1620_v0  ;;  %v1413_v6 = vld [vmem:[#allocation7 + $0x88] sm:$0xff]   ;;  %v1416_v7 = vld [vmem:[#allocation7 + $0x90] sm:$0xff]   ;;  %v1405_v8 = vld [vmem:[#allocation7 + $0x40] sm:$0xff]  }
  0x5c   :  { %1289 = vmatpush3.bf16.msra.mxu1 %v1400_v1  ;;  %1313 = vmatpush3.bf16.msra.mxu0 %v1410_v4  ;;  %v1404_v9 = vld [vmem:[#allocation5 + $0x10] sm:$0xff]   ;;  %v1406_v10 = vld [vmem:[#allocation7] sm:$0xff]   ;;  %v1407_v11 = vld [vmem:[#allocation7 + $0x48] sm:$0xff]  }
  0x5d   :  { %1290 = vmatprep.subr.bf16.mxu1 %v1620_v0  ;;  %1314 = vmatprep.subr.bf16.mxu0 %v1620_v0  ;;  %v1408_v12 = vld [vmem:[#allocation7 + $0x8] sm:$0xff]   ;;  %v1409_v13 = vld [vmem:[#allocation7 + $0x50] sm:$0xff]   ;;  %v1412_v15 = vld [vmem:[#allocation7 + $0x58] sm:$0xff]  }
  0x5e   :  { %v1411_v14 = vld [vmem:[#allocation7 + $0x10] sm:$0xff]   ;;  %v1414_v16 = vld [vmem:[#allocation7 + $0x18] sm:$0xff]   ;;  %v1415_v17 = vld [vmem:[#allocation7 + $0x60] sm:$0xff]  }
  0x5f   :  { %v1417_v18 = vld [vmem:[#allocation7 + $0x20] sm:$0xff]   ;;  %v1418_v19 = vld [vmem:[#allocation7 + $0x68] sm:$0xff]   ;;  %v1419_v20 = vld [vmem:[#allocation7 + $0x98] sm:$0xff]  }
  0x60   :  { %1291 = vmatpush3.bf16.msra.mxu1 %v1401_v2  ;;  %1315 = vmatpush3.bf16.msra.mxu0 %v1413_v6  ;;  %v1420_v21 = vld [vmem:[#allocation7 + $0x28] sm:$0xff]   ;;  %v1421_v22 = vld [vmem:[#allocation7 + $0x70] sm:$0xff]   ;;  %v1422_v23 = vld [vmem:[#allocation7 + $0xa0] sm:$0xff]  }
  0x61   :  { %1296 = vmatprep.subr.bf16.mxu1 %v1620_v0  ;;  %1316 = vmatprep.subr.bf16.mxu0 %v1620_v0  ;;  %v1423_v24 = vld [vmem:[#allocation7 + $0x30] sm:$0xff]   ;;  %v1424_v25 = vld [vmem:[#allocation7 + $0x78] sm:$0xff]   ;;  %v1425_v26 = vld [vmem:[#allocation7 + $0xa8] sm:$0xff]  }
  0x62   :  { %v1426_v27 = vld [vmem:[#allocation7 + $0x38] sm:$0xff]   ;;  %v1427_v28 = vld [vmem:[#allocation7 + $0xb0] sm:$0xff]  }
  0x63   :  { %1293 = vmatmul.mubr.msk.bf16.vlgmr.msra.gmra.mrb[0].mxu1 %vm125_vm1, %v1402_v3  ;;  %v1428_v29 = vld [vmem:[#allocation7 + $0xb8] sm:$0xff]  }
  0x64   :  { %1297 = vmatpush3.bf16.msra.mxu1 %v1400_v1  ;;  %1300 = vmatprep.mubr.msk.bf16.mxu1 %vm1621_vm0, %v1620_v0  ;;  %v1135_v50 = vld [vmem:[%s1852_s3] ss:$0 sm:$0xff] }
  0x65   :  { %1298 = vmatprep.subr.bf16.mxu1 %v1620_v0  ;;  %1317 = vmatpush3.bf16.msra.mxu0 %v1416_v7  ;;  %v1429_v7 = vld [vmem:[#allocation8 + $0x40] sm:$0xff]  }
  0x66   :  { %1318 = vmatprep.subr.bf16.mxu0 %v1620_v0 }
  0x68   :  { %1299 = vmatpush3.bf16.msra.mxu1 %v1401_v2 }
  0x69   :  { %1304 = vmatprep.subr.bf16.mxu1 %v1620_v0  ;;  %1319 = vmatpush3.bf16.msra.mxu0 %v1419_v20  ;;  %v1438_v20 = vld [vmem:[#allocation8 + $0x18] sm:$0xff]  }
  0x6a   :  { %1320 = vmatprep.subr.bf16.mxu0 %v1620_v0 }
  0x6b   :  { %1301 = vmatmul.mubr.msk.bf16.vlgmr.msra.gmra.mrb[4].mxu1 %vm125_vm1, %v1403_v5 }
  0x6c   :  { %1305 = vmatpush3.bf16.msra.mxu1 %v1400_v1  ;;  %1308 = vmatprep.mubr.msk.bf16.mxu1 %vm1621_vm0, %v1620_v0 }
  0x6d   :  { %1306 = vmatprep.subr.bf16.mxu1 %v1620_v0  ;;  %1321 = vmatpush3.bf16.msra.mxu0 %v1422_v23  ;;  %v1441_v23 = vld [vmem:[#allocation8 + $0x20] sm:$0xff]  }
  0x6e   :  { %1322 = vmatprep.subr.bf16.mxu0 %v1620_v0 }
  0x70   :  { %1307 = vmatpush3.bf16.msra.mxu1 %v1401_v2 }
  0x71   :  { %1211 = vmatprep.subr.bf16.mxu1 %v1405_v8  ;;  %1323 = vmatpush3.bf16.msra.mxu0 %v1425_v26  ;;  %v1444_v26 = vld [vmem:[#allocation8 + $0x28] sm:$0xff]  }
  0x72   :  { %1324 = vmatprep.subr.bf16.mxu0 %v1620_v0 }
  0x73   :  { %1309 = vmatmul.mubr.msk.bf16.vlgmr.msra.gmra.mrb[8].mxu1 %vm125_vm1, %v1404_v9  ;;  %v573_v9 = vld [vmem:[%s1853_s4] sm:$0xf] }
  0x74   :  { %1212 = vmatpush3.bf16.msra.mxu1 %v1406_v10  ;;  %v1163_v10 = vld [vmem:[%s1853_s4 + $0x4] sm:$0xf] }
  0x75   :  { %1213 = vmatprep.subr.bf16.mxu1 %v1407_v11  ;;  %1325 = vmatpush3.bf16.msra.mxu0 %v1427_v28  ;;  %v1430_v11 = vld [vmem:[#allocation8] sm:$0xff]  }
  0x76   :  { %1326 = vmatprep.subr.bf16.mxu0 %v1620_v0  ;;  %v1445_v28 = vld [vmem:[#allocation8 + $0xa0] sm:$0xff]  }
  0x78   :  { %1214 = vmatpush3.bf16.msra.mxu1 %v1408_v12  ;;  %v1431_v12 = vld [vmem:[#allocation8 + $0x48] sm:$0xff]  }
  0x79   :  { %1215 = vmatprep.subr.bf16.mxu1 %v1409_v13  ;;  %1327 = vmatpush3.bf16.msra.mxu0 %v1428_v29  ;;  %v1432_v13 = vld [vmem:[#allocation8 + $0x8] sm:$0xff]   ;;  %v1447_v29 = vld [vmem:[#allocation8 + $0x30] sm:$0xff]  }
  0x7a   :  { %1338 = vmatprep.subr.bf16.mxu0 %v1620_v0 }
  0x7c   :  { %1216 = vmatpush3.bf16.msra.mxu1 %v1411_v14  ;;  %v1434_v14 = vld [vmem:[#allocation8 + $0x50] sm:$0xff]  }
  0x7d   :  { %1217 = vmatprep.subr.bf16.mxu1 %v1412_v15  ;;  %v1165_v15 = vld [vmem:[%s1853_s4 + $0x8] sm:$0xf] }
  0x80   :  { %1218 = vmatpush3.bf16.msra.mxu1 %v1414_v16  ;;  %v1433_v16 = vld [vmem:[#allocation8 + $0x80] sm:$0xff]  }
  0x81   :  { %1219 = vmatprep.subr.bf16.mxu1 %v1415_v17  ;;  %v1435_v17 = vld [vmem:[#allocation8 + $0x10] sm:$0xff]  }
  0x84   :  { %1220 = vmatpush3.bf16.msra.mxu1 %v1417_v18  ;;  %v1437_v18 = vld [vmem:[#allocation8 + $0x58] sm:$0xff]  }
  0x85   :  { %1221 = vmatprep.subr.bf16.mxu1 %v1418_v19  ;;  %v1436_v19 = vld [vmem:[#allocation8 + $0x88] sm:$0xff]  }
  0x88   :  { %1222 = vmatpush3.bf16.msra.mxu1 %v1420_v21  ;;  %v1440_v21 = vld [vmem:[#allocation8 + $0x60] sm:$0xff]  }
  0x89   :  { %1223 = vmatprep.subr.bf16.mxu1 %v1421_v22  ;;  %v1439_v22 = vld [vmem:[#allocation8 + $0x90] sm:$0xff]  }
  0x8c   :  { %1224 = vmatpush3.bf16.msra.mxu1 %v1423_v24  ;;  %v1443_v24 = vld [vmem:[#allocation8 + $0x68] sm:$0xff]  }
  0x8d   :  { %1225 = vmatprep.subr.bf16.mxu1 %v1424_v25  ;;  %v1442_v25 = vld [vmem:[#allocation8 + $0x98] sm:$0xff]  }
  0x90   :  { %1226 = vmatpush3.bf16.msra.mxu1 %v1426_v27  ;;  %v1446_v27 = vld [vmem:[#allocation8 + $0x70] sm:$0xff]  }
  0x91   :  { %1332 = vmatprep.subr.bf16.mxu1 %v1620_v0 }
 0x136   :  { %v163_v30 = vpop.f32.mrb[0].mxu1 }
 0x137   :  { %v1294_v31 = vpop.f32.mrb[1].mxu1 }
 0x138   :  { %v166_v32 = vpop.f32.mrb[2].mxu1  ;;  %v1449_v31 = vld [vmem:[#allocation8 + $0x78] sm:$0xff]  }
 0x139   :  { %v274_v33 = vpack.c.bf16 %v166_v32, %v163_v30  ;;  %v1295_v34 = vpop.f32.mrb[3].mxu1  ;;  %v1448_v30 = vld [vmem:[#allocation8 + $0xa8] sm:$0xff]   ;;  %v1450_v32 = vld [vmem:[#allocation8 + $0x38] sm:$0xff]  }
 0x13a   :  { %v1452_v34 = vld [vmem:[#allocation8 + $0xb8] sm:$0xff]  }
 0x13e   :  { %v215_v35 = vpop.f32.mrb[4].mxu1 }
 0x13f   :  { %v1302_v36 = vpop.f32.mrb[5].mxu1 }
 0x140   :  { %v218_v37 = vpop.f32.mrb[6].mxu1 }
 0x141   :  { %v275_v38 = vpack.c.bf16 %v218_v37, %v215_v35  ;;  %v1303_v39 = vpop.f32.mrb[7].mxu1 }
 0x143   :  { %508 = vmatprep.mubr.bf16.mxu1 %v275_v38 }
 0x144   :  { %509 = vmatmul.mubr.bf16.vlgmr.msra.gmra.mrb[12].mxu1 %v274_v33  ;;  %v1451_v33 = vld [vmem:[#allocation8 + $0xb0] sm:$0xff]  }
 0x145   :  { %1334 = vmatprep.mubr.msk.bf16.mxu1 %vm1621_vm0, %v1620_v0 }
 0x146   :  { %v267_v40 = vpop.f32.mrb[8].mxu1 }
 0x147   :  { %v1310_v41 = vpop.f32.mrb[9].mxu1 }
 0x148   :  { %v270_v42 = vpop.f32.mrb[10].mxu1 }
 0x149   :  { %v276_v43 = vpack.c.bf16 %v270_v42, %v267_v40  ;;  %v1311_v44 = vpop.f32.mrb[11].mxu1 }
 0x14b   :  { %1329 = vmatmul.mubr.bf16.vlgmr.msra.gmra.mrb[0].mxu0 %v276_v43 }
 0x14c   :  { %1340 = vmatprep.mubr.msk.bf16.mxu0 %vm1621_vm0, %v1620_v0 }
 0x217   :  { %v1227_v45 = vpop.f32.mrb[12].mxu1 }
 0x218   :  { %v1228_v46 = vpop.f32.mrb[13].mxu1 }
 0x219   :  { %v1229_v47 = vadd.f32 %v1228_v46, %v1227_v45  ;;  %v1230_v48 = vpop.f32.mrb[14].mxu1 }
 0x21a   :  { %v1231_v49 = vpop.f32.mrb[15].mxu1 }
 0x21b   :  { %v1232_v51 = vadd.f32 %v1231_v49, %v1230_v48  ;;  %v511_v52 = vadd.f32 %v1229_v47, %v1135_v50 }
 0x21d   :  { %v514_v56 = vadd.f32 %v1232_v51, %v1135_v50  ;;  %v1453_v50 = vld [vmem:[#allocation10] sm:$0xff]   ;;  %v1454_v51 = vld [vmem:[#allocation10 + $0x8] sm:$0xff]  }
 0x21e   :  { %v551_v53 = vpop.f32.mrb[0].mxu0 }
 0x21f   :  { %v552_v54 = vadd.f32 %v551_v53, %v511_v52  ;;  %v1330_v55 = vpop.f32.mrb[1].mxu0  ;;  %v1455_v52 = vld [vmem:[#allocation10 + $0x10] sm:$0xff]   ;;  %v1456_v53 = vld [vmem:[#allocation10 + $0x18] sm:$0xff]  }
 0x220   :  { %v554_v57 = vpop.f32.mrb[2].mxu0  ;;  %v1458_v55 = vld [vmem:[#allocation10 + $0x28] sm:$0xff]  }
 0x221   :  { %v1160_v58 = vmul.f32 -1.442695, %v552_v54  ;;  %v555_v59 = vadd.f32 %v554_v57, %v514_v56  ;;  %v1331_v60 = vpop.f32.mrb[3].mxu0  ;;  %v1459_v56 = vld [vmem:[#allocation10 + $0x30] sm:$0xff]   ;;  %v1460_v57 = vld [vmem:[#allocation10 + $0x38] sm:$0xff]  }
 0x223   :  { %1461 = vpow2.f32 %v1160_v58  ;;  %v1161_v61 = vmul.f32 -1.442695, %v555_v59 }
 0x225   :  { %1463 = vpow2.f32 %v1161_v61 }
 0x22d   :  { %v1462_v62 = vpop.eup %1461 }
 0x22e   :  { %v564_v63 = vadd.f32 1.0, %v1462_v62 }
 0x22f   :  { %v1464_v1 = vpop.eup %1463 }
 0x230   :  { %1465 = vrcp.f32 %v564_v63  ;;  %v565_v2 = vadd.f32 1.0, %v1464_v1  ;;  %v1167_v63 = vld [vmem:[%s1855_s6] ss:$0 sm:$0xff]  ;;  %s1622_s6 = smov [#allocation11]  }
 0x231   :  { %s1116_s10 = sshll.u32 %s1622_s6, 4  ;;  %s1117_s10 = int_to_ptr.vmem [resolvable:$true] %s1116_s10 }
 0x232   :  { %1467 = vrcp.f32 %v565_v2  ;;  %s1583_s14 = scalar_lea.vmem %s1117_s10, 128  ;;  %p1588_p13 = scmp.lt.s32.totalorder %s1117_s10, %s1117_s10 }
 0x233   :  { %p1584_p12 = scmp.ne.s32.totalorder %s1117_s10, %s1583_s14  ;;  %p1589_p0 = scmp.lt.s32.totalorder %s1583_s14, %s1583_s14 }
 0x235   :  { %p1590_p1 = por %p1589_p0, %p1588_p13 }
 0x237   :  { %p1591_p2 = pnand %p1590_p1, %p1584_p12 }
 0x23a   :  { %v1466_v3 = vpop.eup %1465 }
 0x23b   :  { %v570_v5 = vmul.f32 %v1466_v3, %v552_v54  ;;  %v1457_v54 = vld [vmem:[#allocation10 + $0x20] sm:$0xff]  }
 0x23c   :  { %v1468_v4 = vpop.eup %1467 }
 0x23d   :  { %v571_v6 = vmul.f32 %v1468_v4, %v555_v59 }
 0x23f   :  { %v572_v8 = vpack.c.bf16 %v571_v6, %v570_v5 }
 0x241   :  { %1333 = vmatpush3.bf16.msra.mxu1 %v572_v8  ;;  %1339 = vmatpush3.bf16.msra.mxu0 %v572_v8 }
 0x242   :  { %1344 = vmatprep.subr.bf16.mxu1 %v1620_v0  ;;  %1248 = vmatprep.subr.bf16.mxu0 %v1429_v7 }
 0x244   :  { %1335 = vmatmul.mubr.msk.bf16.vlgmr.msra.gmra.mrb[16].mxu1 %vm574_vm2, %v573_v9  ;;  %1341 = vmatmul.mubr.msk.bf16.vlgmr.msra.gmra.mrb[4].mxu0 %vm574_vm2, %v1163_v10 }
 0x245   :  { %1345 = vmatpush3.bf16.msra.mxu1 %v572_v8  ;;  %1346 = vmatprep.mubr.msk.bf16.mxu1 %vm1621_vm0, %v1620_v0 }
 0x246   :  { %1249 = vmatpush3.bf16.msra.mxu0 %v1430_v11  ;;  %1350 = vmatprep.subr.bf16.mxu1 %v1620_v0 }
 0x247   :  { %1250 = vmatprep.subr.bf16.mxu0 %v1431_v12  ;;  %v1193_v12 = vld [vmem:[%s1857_s8] ss:$0 sm:$0xff] }
 0x24a   :  { %1251 = vmatpush3.bf16.msra.mxu0 %v1432_v13 }
 0x24b   :  { %1252 = vmatprep.subr.bf16.mxu0 %v1434_v14 }
 0x24c   :  { %1347 = vmatmul.mubr.msk.bf16.vlgmr.msra.gmra.mrb[20].mxu1 %vm574_vm2, %v1165_v15 }
 0x24d   :  { %1351 = vmatpush3.bf16.msra.mxu1 %v1433_v16  ;;  %1366 = vmatprep.mubr.msk.bf16.mxu1 %vm1621_vm0, %v1620_v0 }
 0x24e   :  { %1253 = vmatpush3.bf16.msra.mxu0 %v1435_v17  ;;  %1352 = vmatprep.subr.bf16.mxu1 %v1620_v0 }
 0x24f   :  { %1254 = vmatprep.subr.bf16.mxu0 %v1437_v18 }
 0x251   :  { %1353 = vmatpush3.bf16.msra.mxu1 %v1436_v19 }
 0x252   :  { %1255 = vmatpush3.bf16.msra.mxu0 %v1438_v20  ;;  %1354 = vmatprep.subr.bf16.mxu1 %v1620_v0 }
 0x253   :  { %1256 = vmatprep.subr.bf16.mxu0 %v1440_v21 }
 0x255   :  { %1355 = vmatpush3.bf16.msra.mxu1 %v1439_v22 }
 0x256   :  { %1257 = vmatpush3.bf16.msra.mxu0 %v1441_v23  ;;  %1356 = vmatprep.subr.bf16.mxu1 %v1620_v0 }
 0x257   :  { %1258 = vmatprep.subr.bf16.mxu0 %v1443_v24 }
 0x259   :  { %1357 = vmatpush3.bf16.msra.mxu1 %v1442_v25 }
 0x25a   :  { %1259 = vmatpush3.bf16.msra.mxu0 %v1444_v26  ;;  %1358 = vmatprep.subr.bf16.mxu1 %v1620_v0 }
 0x25b   :  { %1260 = vmatprep.subr.bf16.mxu0 %v1446_v27 }
 0x25d   :  { %1359 = vmatpush3.bf16.msra.mxu1 %v1445_v28 }
 0x25e   :  { %1261 = vmatpush3.bf16.msra.mxu0 %v1447_v29  ;;  %1360 = vmatprep.subr.bf16.mxu1 %v1620_v0 }
 0x25f   :  { %1262 = vmatprep.subr.bf16.mxu0 %v1449_v31 }
 0x261   :  { %1361 = vmatpush3.bf16.msra.mxu1 %v1448_v30 }
 0x262   :  { %1362 = vmatprep.subr.bf16.mxu1 %v1620_v0  ;;  %1263 = vmatpush3.bf16.msra.mxu0 %v1450_v32 }
 0x263   :  { %1370 = vmatprep.subr.bf16.mxu0 %v1620_v0 }
 0x265   :  { %1363 = vmatpush3.bf16.msra.mxu1 %v1451_v33 }
 0x266   :  { %1364 = vmatprep.subr.bf16.mxu1 %v1620_v0 }
 0x269   :  { %1365 = vmatpush3.bf16.msra.mxu1 %v1452_v34 }
 0x317   :  { %v657_v35 = vpop.f32.mrb[4].mxu0  ;;  %v612_v36 = vpop.f32.mrb[16].mxu1 }
 0x318   :  { %v709_v37 = vpack.c.bf16 %v657_v35, %v657_v35  ;;  %v708_v38 = vpack.c.bf16 %v612_v36, %v612_v36  ;;  %v1336_v39 = vpop.f32.mrb[17].mxu1  ;;  %v1342_v40 = vpop.f32.mrb[5].mxu0 }
 0x319   :  { %v615_v41 = vpop.f32.mrb[18].mxu1  ;;  %v660_v42 = vpop.f32.mrb[6].mxu0 }
 0x31a   :  { %942 = vmatprep.mubr.bf16.mxu0 %v709_v37  ;;  %v1337_v43 = vpop.f32.mrb[19].mxu1  ;;  %v1343_v44 = vpop.f32.mrb[7].mxu0 }
 0x31b   :  { %943 = vmatmul.mubr.bf16.vlgmr.msra.gmra.mrb[8].mxu0 %v708_v38 }
 0x31c   :  { %1386 = vmatprep.mubr.msk.bf16.mxu0 %vm1621_vm0, %v1620_v0  ;;  %1371 = vmatpush3.bf16.msra.mxu0 %v1453_v50 }
 0x31d   :  { %1372 = vmatprep.subr.bf16.mxu0 %v1620_v0 }
 0x31f   :  { %v702_v45 = vpop.f32.mrb[20].mxu1 }
 0x320   :  { %v710_v46 = vpack.c.bf16 %v702_v45, %v702_v45  ;;  %v1348_v47 = vpop.f32.mrb[21].mxu1  ;;  %1373 = vmatpush3.bf16.msra.mxu0 %v1454_v51 }
 0x321   :  { %v705_v48 = vpop.f32.mrb[22].mxu1  ;;  %1374 = vmatprep.subr.bf16.mxu0 %v1620_v0 }
 0x322   :  { %1367 = vmatmul.mubr.bf16.vlgmr.msra.gmra.mrb[24].mxu1 %v710_v46  ;;  %v1349_v49 = vpop.f32.mrb[23].mxu1 }
 0x324   :  { %1375 = vmatpush3.bf16.msra.mxu0 %v1455_v52 }
 0x325   :  { %1376 = vmatprep.subr.bf16.mxu0 %v1620_v0 }
 0x328   :  { %1377 = vmatpush3.bf16.msra.mxu0 %v1456_v53 }
 0x329   :  { %1378 = vmatprep.subr.bf16.mxu0 %v1620_v0 }
 0x32c   :  { %1379 = vmatpush3.bf16.msra.mxu0 %v1457_v54 }
 0x32d   :  { %1380 = vmatprep.subr.bf16.mxu0 %v1620_v0 }
 0x330   :  { %1381 = vmatpush3.bf16.msra.mxu0 %v1458_v55 }
 0x331   :  { %1382 = vmatprep.subr.bf16.mxu0 %v1620_v0 }
 0x334   :  { %1383 = vmatpush3.bf16.msra.mxu0 %v1459_v56 }
 0x335   :  { %1384 = vmatprep.subr.bf16.mxu0 %v1620_v0 }
 0x338   :  { %1385 = vmatpush3.bf16.msra.mxu0 %v1460_v57 }
 0x3ee   :  { %v1264_v58 = vpop.f32.mrb[8].mxu0 }
 0x3ef   :  { %v1265_v59 = vpop.f32.mrb[9].mxu0 }
 0x3f0   :  { %v1266_v60 = vadd.f32 %v1265_v59, %v1264_v58  ;;  %v1267_v61 = vpop.f32.mrb[10].mxu0 }
 0x3f1   :  { %v1268_v62 = vpop.f32.mrb[11].mxu0 }
 0x3f2   :  { %v945_v1 = vadd.f32 %v1266_v60, %v1167_v63 }
 0x3f5   :  { %v984_v2 = vpop.f32.mrb[24].mxu1 }
 0x3f6   :  { %v985_v3 = vadd.f32 %v984_v2, %v945_v1  ;;  %v1368_v4 = vpop.f32.mrb[25].mxu1 }
 0x3f7   :  { %v987_v5 = vpop.f32.mrb[26].mxu1 }
 0x3f8   :  { %v1192_v6 = vmul.f32 -1.442695, %v985_v3  ;;  %v1369_v7 = vpop.f32.mrb[27].mxu1 }
 0x3fa   :  { %1469 = vpow2.f32 %v1192_v6 }
 0x404   :  { %v1470_v0 = vpop.eup %1469 }
 0x405   :  { %v993_v8 = vadd.f32 1.0, %v1470_v0 }
 0x407   :  { %1471 = vrcp.f32 %v993_v8 }
 0x411   :  { %v1472_v9 = vpop.eup %1471 }
 0x412   :  { %v996_v10 = vmul.f32 %v1472_v9, %v985_v3 }
 0x414   :  { %v997_v11 = vpack.c.bf16 %v996_v10, %v996_v10 }
 0x416   :  { %1387 = vmatmul.mubr.bf16.vlgmr.msra.gmra.mrb[12].mxu0 %v997_v11 }
 0x4e9   :  { %v1103_v13 = vpop.f32.mrb[12].mxu0 }
 0x4ea   :  { %v1104_v14 = vadd.f32 %v1193_v12, %v1103_v13  ;;  %v1388_v15 = vpop.f32.mrb[13].mxu0 }
 0x4eb   :  { %v1106_v16 = vpop.f32.mrb[14].mxu0 }
 0x4ec   :  { %1109 = vst [vmem:[#allocation11] sm:$0xff] %v1104_v14  ;;  %v1389_v17 = vpop.f32.mrb[15].mxu0 }
 0x4ed   :  { %1594 = shalt.err (!%p1591_p2)
}
 0x4ee   :  { %s1595_s8 = scalar_lea.hbm %s1858_s9, 128 }
 0x4ef   :  { %p1596_p3 = scmp.ne.s32.totalorder %s1858_s9, %s1595_s8  ;;  %p1599_p4 = scmp.lt.u32.totalorder %s1595_s8, %s1858_s9 }
 0x4f1   :  { %p1601_p5 = pnand %p1599_p4, %p1596_p3 }
 0x4f3   :  { %1604 = shalt.err (!%p1601_p5)
}
 0x4f4   :  { %1119 = dma.vmem_to_hbm [thread:$0]  %s1117_s10, 128, %s1858_s9, [#allocation4]  }
 0x4f5   :  { %1611 = dma.done.wait [#allocation4], 128  }
 0x4f6   :  { %1612 = vsyncadd [#allocation4], 4294967168 }
 0x4f7   :  { %1123 = vsyncpa [#allocation3], 1 }
 0x4f8   :  { %1124 = vsyncpa [#allocation6], 1 }
 0x4f9   :  { %1125 = vsyncpa [#allocation9], 1 }
 0x4fa   :  { %1126 = vsyncpa [#allocation4], 1 }

</bundles_post_ra>
